<compile_context>
chip_gen: v7x
topology: tpu7x:2x2x1
jax: 0.10.0
libtpu: 0.0.40
codegen_flags: <defaults>
</compile_context>

<pallas_src>
import math
import jax
import jax.numpy as jnp
from jax.experimental import pallas as pl
from jax.experimental.pallas import tpu as pltpu

LANE = 128
ENCODED_SIZE = 2                  # random features per encoder
INPUT_SIZE = 4 * ENCODED_SIZE     # hstack of two encoders (cos+sin each) = 8
HIDDEN_UNITS = 32
NUM_HIDDEN_LAYERS = 4             # layers 1..4 (layer 0 and output layer separate)
TARGET_BLOCK_N = 8192             # lanes per grid step for large N


# ----------------------------- Pallas kernels ------------------------------

def _mlp_stack(feat_f32, w0_ref, b0_ref, wh_ref, bh_ref, w5_ref, b5_ref, out_ref):
    """6-layer MLP in transposed layout: activations are (features, block_n).

    Compute dtype is taken from the weights (f32 on v5e, bf16 on v6e/v7x).
    Biases and MXU accumulation stay f32; tanh runs in the compute dtype so the
    bf16 path halves EUP/VPU vreg work on chips with native bf16 units.
    """
    cdt = w0_ref.dtype
    h = feat_f32.astype(cdt)
    pre = jnp.dot(w0_ref[...], h, preferred_element_type=jnp.float32) + b0_ref[...]
    h = jnp.tanh(pre.astype(cdt))
    for j in range(NUM_HIDDEN_LAYERS):            # statically unrolled
        pre = jnp.dot(wh_ref[j], h, preferred_element_type=jnp.float32) + bh_ref[j]
        h = jnp.tanh(pre.astype(cdt))
    out_ref[...] = (
        jnp.dot(w5_ref[...], h, preferred_element_type=jnp.float32) + b5_ref[...]
    ).astype(out_ref.dtype)


def pinn_fourier_kernel(x_ref, freq_ref, phase_ref,
                        w0_ref, b0_ref, wh_ref, bh_ref, w5_ref, b5_ref, out_ref):
    """Raw-coordinate branch: Fourier-encode (1, bn) -> (8, bn) in f32, then MLP."""
    feat = jnp.cos(x_ref[...] * freq_ref[...] + phase_ref[...])   # (8, block_n) f32
    _mlp_stack(feat, w0_ref, b0_ref, wh_ref, bh_ref, w5_ref, b5_ref, out_ref)


def pinn_direct_kernel(x_ref,
                       w0_ref, b0_ref, wh_ref, bh_ref, w5_ref, b5_ref, out_ref):
    """Branch where x already has input_size features (no encoding)."""
    _mlp_stack(x_ref[...], w0_ref, b0_ref, wh_ref, bh_ref, w5_ref, b5_ref, out_ref)


# ------------------------------ host helpers -------------------------------

def default_compute_dtype():
    """bf16 for the MLP on v6e/v7x (native bf16 EUP/VPU/MXU); f32 otherwise (v5e)."""
    try:
        kind = jax.devices()[0].device_kind.lower()
    except Exception:
        return jnp.float32
    if "v6" in kind or "v7" in kind:
        return jnp.bfloat16
    return jnp.float32


def prepare_pinn_params(params, compute_dtype=jnp.float32):
    """One-time weight packing + dtype casts (hoisted out of the per-call path)."""
    w0, b0, w1, b1, w2, b2, w3, b3, w4, b4, w5, b5 = params
    wh = jnp.stack([w1, w2, w3, w4]).astype(compute_dtype)   # (4, H, H)
    bh = jnp.stack([b1, b2, b3, b4]).astype(jnp.float32)     # (4, H, 1), f32 adds
    return (w0.astype(compute_dtype), b0.astype(jnp.float32),
            wh, bh,
            w5.astype(compute_dtype), b5.astype(jnp.float32))


def _const_spec(shape):
    """Whole-array block, same block for every grid step (grid-invariant)."""
    zeros = (0,) * len(shape)
    return pl.BlockSpec(shape, lambda i, _z=zeros: _z)


def _choose_tiling(n, requested_block_n=None):
    """Pick (block_n, grid_n, n_pad): pad only to 128 lanes, clamp block_n, and
    keep >= 2 grid steps when possible so v7x's two TensorCores both work."""
    tiles = pl.cdiv(n, LANE)
    target = int(requested_block_n) if requested_block_n else TARGET_BLOCK_N
    target_tpb = max(1, target // LANE)
    if tiles >= 2:
        tpb = max(1, min(target_tpb, tiles // 2))
    else:
        tpb = 1
    block_n = tpb * LANE
    grid_n = pl.cdiv(tiles, tpb)
    return block_n, grid_n, grid_n * block_n


def _cost_estimate(n_pad, fourier_branch, compute_dtype):
    mm_flops = (INPUT_SIZE * HIDDEN_UNITS
                + NUM_HIDDEN_LAYERS * HIDDEN_UNITS * HIDDEN_UNITS
                + HIDDEN_UNITS)
    trans = 5 * HIDDEN_UNITS + (INPUT_SIZE if fourier_branch else 0)
    wbytes = jnp.dtype(compute_dtype).itemsize
    bytes_w = (wbytes * (INPUT_SIZE * HIDDEN_UNITS
                         + NUM_HIDDEN_LAYERS * HIDDEN_UNITS * HIDDEN_UNITS
                         + HIDDEN_UNITS)
               + 4 * ((NUM_HIDDEN_LAYERS + 1) * HIDDEN_UNITS + 1))
    bytes_io = 4 * n_pad * ((1 if fourier_branch else INPUT_SIZE) + 1)
    if fourier_branch:
        bytes_io += 4 * 2 * INPUT_SIZE
    return pl.CostEstimate(flops=2 * mm_flops * n_pad,
                           transcendentals=trans * n_pad,
                           bytes_accessed=int(bytes_w + bytes_io))


def pinn_forward(x, packed_params, freq=None, phase=None, block_n=None):
    """Forward pass.

    x             : (N, 1) raw coords (Fourier branch) or (N, input_size) encoded.
    packed_params : output of prepare_pinn_params (w0, b0, wh, bh, w5, b5).
    freq/phase    : (input_size, 1) f32, Fourier branch only.
    """
    n, f = x.shape
    w0 = packed_params[0]
    input_size = w0.shape[1]

    block_n, grid_n, n_pad = _choose_tiling(n, block_n)
    grid = (grid_n,)

    weight_specs = [_const_spec(p.shape) for p in packed_params]
    out_spec = pl.BlockSpec((1, block_n), lambda i: (0, i))
    out_shape = jax.ShapeDtypeStruct((1, n_pad), jnp.float32)
    cparams = pltpu.CompilerParams(dimension_semantics=("parallel",))

    # transpose to (features, N) and pad the point axis (lanes) to n_pad
    xt = jnp.pad(x.astype(jnp.float32).T, ((0, 0), (0, n_pad - n)))

    if f == input_size:
        x_spec = pl.BlockSpec((f, block_n), lambda i: (0, i))
        out = pl.pallas_call(
            pinn_direct_kernel,
            out_shape=out_shape,
            grid=grid,
            in_specs=[x_spec] + weight_specs,
            out_specs=out_spec,
            compiler_params=cparams,
            cost_estimate=_cost_estimate(n_pad, False, w0.dtype),
        )(xt, *packed_params)
    else:
        x_spec = pl.BlockSpec((1, block_n), lambda i: (0, i))
        out = pl.pallas_call(
            pinn_fourier_kernel,
            out_shape=out_shape,
            grid=grid,
            in_specs=[x_spec, _const_spec(freq.shape), _const_spec(phase.shape)]
            + weight_specs,
            out_specs=out_spec,
            compiler_params=cparams,
            cost_estimate=_cost_estimate(n_pad, True, w0.dtype),
        )(xt, freq, phase, *packed_params)

    return out[:, :n].T                        # (N, 1)


# --------------------------- deterministic params --------------------------

def xavier_uniform(key, fan_in, fan_out):
    limit = math.sqrt(6.0 / (fan_in + fan_out))
    # PyTorch nn.Linear layout: weight is (out_features, in_features)
    return jax.random.uniform(key, (fan_out, fan_in), jnp.float32, -limit, limit)


def make_params(key, hidden_units, input_size):
    dims = [input_size] + [hidden_units] * 5 + [1]
    params = []
    for i in range(6):
        key, sub = jax.random.split(key)
        w = xavier_uniform(sub, dims[i], dims[i + 1])            # (out, in)
        b = jnp.full((dims[i + 1], 1), 0.01, jnp.float32)        # bias.fill_(0.01)
        params += [w, b]
    return params


# ------------------------------ pure-JAX ref -------------------------------

def ref_encode(x, B2, B50):
    vp2 = 2.0 * jnp.pi * x @ B2.T
    x_2 = jnp.concatenate([jnp.cos(vp2), jnp.sin(vp2)], axis=-1)
    vp50 = 2.0 * jnp.pi * x @ B50.T
    x_50 = jnp.concatenate([jnp.cos(vp50), jnp.sin(vp50)], axis=-1)
    return jnp.concatenate([x_2, x_50], axis=-1)


def ref_forward(x, B2, B50, params):
    h = ref_encode(x, B2, B50)
    for i in range(6):
        w, b = params[2 * i], params[2 * i + 1]   # (out, in), (out, 1)
        h = h @ w.T + b.T
        if i < 5:
            h = jnp.tanh(h)
    return h


# ----------------------------------- main -----------------------------------

if __name__ == "__main__":
    key = jax.random.PRNGKey(0)
    kx, kb2, kb50, kp = jax.random.split(key, 4)

    N = 300                                    # deliberately not a multiple of 128
    x = jax.random.uniform(kx, (N, 1), jnp.float32, -1.0, 1.0)

    # Gaussian random-Fourier-feature frequency matrices (B_2 = 2*randn, B_50 = 50*randn)
    B2 = 2.0 * jax.random.normal(kb2, (ENCODED_SIZE, 1), jnp.float32)
    B50 = 50.0 * jax.random.normal(kb50, (ENCODED_SIZE, 1), jnp.float32)

    # Fold [cos(vp), sin(vp)] per encoder + hstack into one cos(freq*x + phase),
    # with the 2*pi constant folded into freq on the host.
    freq = (2.0 * jnp.pi) * jnp.concatenate(
        [B2[:, 0], B2[:, 0], B50[:, 0], B50[:, 0]]
    ).reshape(INPUT_SIZE, 1)
    phase = jnp.array(
        [0.0, 0.0, -jnp.pi / 2, -jnp.pi / 2, 0.0, 0.0, -jnp.pi / 2, -jnp.pi / 2],
        jnp.float32,
    ).reshape(INPUT_SIZE, 1)

    params = make_params(kp, HIDDEN_UNITS, INPUT_SIZE)
    ref = ref_forward(x, B2, B50, params)

    # --- f32 path (all TPU generations), both forward branches -----------------
    packed_f32 = prepare_pinn_params(params, jnp.float32)

    out = jax.block_until_ready(pinn_forward(x, packed_f32, freq=freq, phase=phase))
    assert out.shape == (N, 1)
    assert jnp.allclose(out, ref, atol=1e-3, rtol=1e-3), (
        float(jnp.max(jnp.abs(out - ref)))
    )

    x_enc = ref_encode(x, B2, B50)             # already-encoded branch (N, 8)
    out2 = jax.block_until_ready(pinn_forward(x_enc, packed_f32))
    assert out2.shape == (N, 1)
    assert jnp.allclose(out2, ref, atol=1e-3, rtol=1e-3), (
        float(jnp.max(jnp.abs(out2 - ref)))
    )

    # --- bf16 activation path, gated to chips with native bf16 EUP/VPU ---------
    cdt = default_compute_dtype()
    if cdt == jnp.bfloat16:
        packed_bf16 = prepare_pinn_params(params, jnp.bfloat16)
        out3 = jax.block_until_ready(
            pinn_forward(x, packed_bf16, freq=freq, phase=phase))
        assert out3.shape == (N, 1)
        # Fourier encoding stays f32; bf16 activations/weights tolerate ~1e-2 drift.
        assert jnp.allclose(out3, ref, atol=5e-2, rtol=5e-2), (
            float(jnp.max(jnp.abs(out3 - ref)))
        )

    print("KERNEL_OK")
</pallas_src>

<mosaic_0001>
module attributes {stable_mosaic.version = 11 : i64} {
  func.func @pinn_fourier_kernel(%arg0: i32, %arg1: memref<1x128xf32, #tpu.memory_space<vmem>>, %arg2: memref<8x1xf32, #tpu.memory_space<vmem>>, %arg3: memref<8x1xf32, #tpu.memory_space<vmem>>, %arg4: memref<32x8xf32, #tpu.memory_space<vmem>>, %arg5: memref<32x1xf32, #tpu.memory_space<vmem>>, %arg6: memref<4x32x32xf32, #tpu.memory_space<vmem>>, %arg7: memref<4x32x1xf32, #tpu.memory_space<vmem>>, %arg8: memref<1x32xf32, #tpu.memory_space<vmem>>, %arg9: memref<1x1xf32, #tpu.memory_space<vmem>>, %arg10: memref<1x128xf32, #tpu.memory_space<vmem>>) attributes {dimension_semantics = [#tpu.dimension_semantics<parallel>], iteration_bounds = array<i64: 3>, scalar_prefetch = 0 : i64, scratch_operands = 0 : i64, tpu.core_type = #tpu.core_type<tc>, window_params = [{transform_indices = @transform_0, window_bounds = array<i64: 1, 128>}, {pipeline_mode = #tpu.pipeline_mode<synchronous>, transform_indices = @transform_1, window_bounds = array<i64: 8, 1>}, {pipeline_mode = #tpu.pipeline_mode<synchronous>, transform_indices = @transform_2, window_bounds = array<i64: 8, 1>}, {pipeline_mode = #tpu.pipeline_mode<synchronous>, transform_indices = @transform_3, window_bounds = array<i64: 32, 8>}, {pipeline_mode = #tpu.pipeline_mode<synchronous>, transform_indices = @transform_4, window_bounds = array<i64: 32, 1>}, {pipeline_mode = #tpu.pipeline_mode<synchronous>, transform_indices = @transform_5, window_bounds = array<i64: 4, 32, 32>}, {pipeline_mode = #tpu.pipeline_mode<synchronous>, transform_indices = @transform_6, window_bounds = array<i64: 4, 32, 1>}, {pipeline_mode = #tpu.pipeline_mode<synchronous>, transform_indices = @transform_7, window_bounds = array<i64: 1, 32>}, {pipeline_mode = #tpu.pipeline_mode<synchronous>, transform_indices = @transform_8, window_bounds = array<i64: 1, 1>}, {transform_indices = @transform_9, window_bounds = array<i64: 1, 128>}]} {
    %c0 = arith.constant 0 : index
    %c0_0 = arith.constant 0 : index
    %0 = vector.load %arg1[%c0, %c0_0] : memref<1x128xf32, #tpu.memory_space<vmem>>, vector<1x128xf32>
    %c0_1 = arith.constant 0 : index
    %c0_2 = arith.constant 0 : index
    %1 = vector.load %arg2[%c0_1, %c0_2] : memref<8x1xf32, #tpu.memory_space<vmem>>, vector<8x1xf32>
    %2 = vector.broadcast %0 : vector<1x128xf32> to vector<8x128xf32>
    %3 = vector.broadcast %1 : vector<8x1xf32> to vector<8x128xf32>
    %4 = arith.mulf %2, %3 : vector<8x128xf32>
    %c0_3 = arith.constant 0 : index
    %c0_4 = arith.constant 0 : index
    %5 = vector.load %arg3[%c0_3, %c0_4] : memref<8x1xf32, #tpu.memory_space<vmem>>, vector<8x1xf32>
    %6 = vector.broadcast %5 : vector<8x1xf32> to vector<8x128xf32>
    %7 = arith.addf %4, %6 : vector<8x128xf32>
    %8 = math.cos %7 : vector<8x128xf32>
    %c0_5 = arith.constant 0 : index
    %c0_6 = arith.constant 0 : index
    %9 = vector.load %arg4[%c0_5, %c0_6] : memref<32x8xf32, #tpu.memory_space<vmem>>, vector<32x8xf32>
    %cst = arith.constant dense<0.000000e+00> : vector<32x128xf32>
    %10 = tpu.matmul %9, %8, %cst {dimension_numbers = #tpu.dot_dimension_numbers<[1], [0], [0], [1], [0, 0, 1, 1], [], []>} : vector<32x8xf32>, vector<8x128xf32>, vector<32x128xf32> -> vector<32x128xf32>
    %c0_7 = arith.constant 0 : index
    %c0_8 = arith.constant 0 : index
    %11 = vector.load %arg5[%c0_7, %c0_8] : memref<32x1xf32, #tpu.memory_space<vmem>>, vector<32x1xf32>
    %12 = vector.broadcast %11 : vector<32x1xf32> to vector<32x128xf32>
    %13 = arith.addf %10, %12 : vector<32x128xf32>
    %14 = math.tanh %13 : vector<32x128xf32>
    %c0_9 = arith.constant 0 : index
    %c0_10 = arith.constant 0 : index
    %c0_11 = arith.constant 0 : index
    %15 = vector.load %arg6[%c0_9, %c0_10, %c0_11] : memref<4x32x32xf32, #tpu.memory_space<vmem>>, vector<1x32x32xf32>
    %16 = vector.shape_cast %15 : vector<1x32x32xf32> to vector<32x32xf32>
    %cst_12 = arith.constant dense<0.000000e+00> : vector<32x128xf32>
    %17 = tpu.matmul %16, %14, %cst_12 {dimension_numbers = #tpu.dot_dimension_numbers<[1], [0], [0], [1], [0, 0, 1, 1], [], []>} : vector<32x32xf32>, vector<32x128xf32>, vector<32x128xf32> -> vector<32x128xf32>
    %c0_13 = arith.constant 0 : index
    %c0_14 = arith.constant 0 : index
    %c0_15 = arith.constant 0 : index
    %18 = vector.load %arg7[%c0_13, %c0_14, %c0_15] : memref<4x32x1xf32, #tpu.memory_space<vmem>>, vector<1x32x1xf32>
    %19 = vector.shape_cast %18 : vector<1x32x1xf32> to vector<32x1xf32>
    %20 = vector.broadcast %19 : vector<32x1xf32> to vector<32x128xf32>
    %21 = arith.addf %17, %20 : vector<32x128xf32>
    %22 = math.tanh %21 : vector<32x128xf32>
    %c1 = arith.constant 1 : index
    %c0_16 = arith.constant 0 : index
    %c0_17 = arith.constant 0 : index
    %23 = vector.load %arg6[%c1, %c0_16, %c0_17] : memref<4x32x32xf32, #tpu.memory_space<vmem>>, vector<1x32x32xf32>
    %24 = vector.shape_cast %23 : vector<1x32x32xf32> to vector<32x32xf32>
    %cst_18 = arith.constant dense<0.000000e+00> : vector<32x128xf32>
    %25 = tpu.matmul %24, %22, %cst_18 {dimension_numbers = #tpu.dot_dimension_numbers<[1], [0], [0], [1], [0, 0, 1, 1], [], []>} : vector<32x32xf32>, vector<32x128xf32>, vector<32x128xf32> -> vector<32x128xf32>
    %c1_19 = arith.constant 1 : index
    %c0_20 = arith.constant 0 : index
    %c0_21 = arith.constant 0 : index
    %26 = vector.load %arg7[%c1_19, %c0_20, %c0_21] : memref<4x32x1xf32, #tpu.memory_space<vmem>>, vector<1x32x1xf32>
    %27 = vector.shape_cast %26 : vector<1x32x1xf32> to vector<32x1xf32>
    %28 = vector.broadcast %27 : vector<32x1xf32> to vector<32x128xf32>
    %29 = arith.addf %25, %28 : vector<32x128xf32>
    %30 = math.tanh %29 : vector<32x128xf32>
    %c2 = arith.constant 2 : index
    %c0_22 = arith.constant 0 : index
    %c0_23 = arith.constant 0 : index
    %31 = vector.load %arg6[%c2, %c0_22, %c0_23] : memref<4x32x32xf32, #tpu.memory_space<vmem>>, vector<1x32x32xf32>
    %32 = vector.shape_cast %31 : vector<1x32x32xf32> to vector<32x32xf32>
    %cst_24 = arith.constant dense<0.000000e+00> : vector<32x128xf32>
    %33 = tpu.matmul %32, %30, %cst_24 {dimension_numbers = #tpu.dot_dimension_numbers<[1], [0], [0], [1], [0, 0, 1, 1], [], []>} : vector<32x32xf32>, vector<32x128xf32>, vector<32x128xf32> -> vector<32x128xf32>
    %c2_25 = arith.constant 2 : index
    %c0_26 = arith.constant 0 : index
    %c0_27 = arith.constant 0 : index
    %34 = vector.load %arg7[%c2_25, %c0_26, %c0_27] : memref<4x32x1xf32, #tpu.memory_space<vmem>>, vector<1x32x1xf32>
    %35 = vector.shape_cast %34 : vector<1x32x1xf32> to vector<32x1xf32>
    %36 = vector.broadcast %35 : vector<32x1xf32> to vector<32x128xf32>
    %37 = arith.addf %33, %36 : vector<32x128xf32>
    %38 = math.tanh %37 : vector<32x128xf32>
    %c3 = arith.constant 3 : index
    %c0_28 = arith.constant 0 : index
    %c0_29 = arith.constant 0 : index
    %39 = vector.load %arg6[%c3, %c0_28, %c0_29] : memref<4x32x32xf32, #tpu.memory_space<vmem>>, vector<1x32x32xf32>
    %40 = vector.shape_cast %39 : vector<1x32x32xf32> to vector<32x32xf32>
    %cst_30 = arith.constant dense<0.000000e+00> : vector<32x128xf32>
    %41 = tpu.matmul %40, %38, %cst_30 {dimension_numbers = #tpu.dot_dimension_numbers<[1], [0], [0], [1], [0, 0, 1, 1], [], []>} : vector<32x32xf32>, vector<32x128xf32>, vector<32x128xf32> -> vector<32x128xf32>
    %c3_31 = arith.constant 3 : index
    %c0_32 = arith.constant 0 : index
    %c0_33 = arith.constant 0 : index
    %42 = vector.load %arg7[%c3_31, %c0_32, %c0_33] : memref<4x32x1xf32, #tpu.memory_space<vmem>>, vector<1x32x1xf32>
    %43 = vector.shape_cast %42 : vector<1x32x1xf32> to vector<32x1xf32>
    %44 = vector.broadcast %43 : vector<32x1xf32> to vector<32x128xf32>
    %45 = arith.addf %41, %44 : vector<32x128xf32>
    %46 = math.tanh %45 : vector<32x128xf32>
    %c0_34 = arith.constant 0 : index
    %c0_35 = arith.constant 0 : index
    %47 = vector.load %arg8[%c0_34, %c0_35] : memref<1x32xf32, #tpu.memory_space<vmem>>, vector<1x32xf32>
    %cst_36 = arith.constant dense<0.000000e+00> : vector<1x128xf32>
    %48 = tpu.matmul %47, %46, %cst_36 {dimension_numbers = #tpu.dot_dimension_numbers<[1], [0], [0], [1], [0, 0, 1, 1], [], []>} : vector<1x32xf32>, vector<32x128xf32>, vector<1x128xf32> -> vector<1x128xf32>
    %c0_37 = arith.constant 0 : index
    %c0_38 = arith.constant 0 : index
    %49 = vector.load %arg9[%c0_37, %c0_38] : memref<1x1xf32, #tpu.memory_space<vmem>>, vector<1x1xf32>
    %50 = vector.broadcast %49 : vector<1x1xf32> to vector<1x128xf32>
    %51 = arith.addf %48, %50 : vector<1x128xf32>
    %c0_39 = arith.constant 0 : index
    %c0_40 = arith.constant 0 : index
    %52 = vector.load %arg10[%c0_39, %c0_40] : memref<1x128xf32, #tpu.memory_space<vmem>>, vector<1x128xf32>
    tpu.vector_store %arg10[%c0_39, %c0_40], %51 {strides = array<i32>} : memref<1x128xf32, #tpu.memory_space<vmem>>, vector<1x128xf32>,
    return
  }
  func.func @transform_0(%arg0: i32) -> (i32, i32) {
    %c0_i32 = arith.constant 0 : i32
    %c0_i32_0 = arith.constant 0 : i32
    return %c0_i32, %arg0 : i32, i32
  }
  func.func @transform_1(%arg0: i32) -> (i32, i32) {
    %c0_i32 = arith.constant 0 : i32
    %c0_i32_0 = arith.constant 0 : i32
    %c0_i32_1 = arith.constant 0 : i32
    return %c0_i32, %c0_i32_0 : i32, i32
  }
  func.func @transform_2(%arg0: i32) -> (i32, i32) {
    %c0_i32 = arith.constant 0 : i32
    %c0_i32_0 = arith.constant 0 : i32
    %c0_i32_1 = arith.constant 0 : i32
    return %c0_i32, %c0_i32_0 : i32, i32
  }
  func.func @transform_3(%arg0: i32) -> (i32, i32) {
    %c0_i32 = arith.constant 0 : i32
    %c0_i32_0 = arith.constant 0 : i32
    %c0_i32_1 = arith.constant 0 : i32
    return %c0_i32, %c0_i32_0 : i32, i32
  }
  func.func @transform_4(%arg0: i32) -> (i32, i32) {
    %c0_i32 = arith.constant 0 : i32
    %c0_i32_0 = arith.constant 0 : i32
    %c0_i32_1 = arith.constant 0 : i32
    return %c0_i32, %c0_i32_0 : i32, i32
  }
  func.func @transform_5(%arg0: i32) -> (i32, i32, i32) {
    %c0_i32 = arith.constant 0 : i32
    %c0_i32_0 = arith.constant 0 : i32
    %c0_i32_1 = arith.constant 0 : i32
    %c0_i32_2 = arith.constant 0 : i32
    return %c0_i32, %c0_i32_0, %c0_i32_1 : i32, i32, i32
  }
  func.func @transform_6(%arg0: i32) -> (i32, i32, i32) {
    %c0_i32 = arith.constant 0 : i32
    %c0_i32_0 = arith.constant 0 : i32
    %c0_i32_1 = arith.constant 0 : i32
    %c0_i32_2 = arith.constant 0 : i32
    return %c0_i32, %c0_i32_0, %c0_i32_1 : i32, i32, i32
  }
  func.func @transform_7(%arg0: i32) -> (i32, i32) {
    %c0_i32 = arith.constant 0 : i32
    %c0_i32_0 = arith.constant 0 : i32
    %c0_i32_1 = arith.constant 0 : i32
    return %c0_i32, %c0_i32_0 : i32, i32
  }
  func.func @transform_8(%arg0: i32) -> (i32, i32) {
    %c0_i32 = arith.constant 0 : i32
    %c0_i32_0 = arith.constant 0 : i32
    %c0_i32_1 = arith.constant 0 : i32
    return %c0_i32, %c0_i32_0 : i32, i32
  }
  func.func @transform_9(%arg0: i32) -> (i32, i32) {
    %c0_i32 = arith.constant 0 : i32
    %c0_i32_0 = arith.constant 0 : i32
    return %c0_i32, %arg0 : i32, i32
  }
}

</mosaic_0001>

<bundles_post_ra>
// kernel: tpu_custom_call.1
= control target key start
LH: loop header
LB: loop body
LE: loop exit
PB: predicated region body
PF: predicated region fallthrough
CT: control target
= control target key end

     0   :  { %s1963_s0 = inlined_call_operand.vmem [shape: f32[1,384], index: 0, kind: input, shape index: {}]   ;;  %s1964_s1 = inlined_call_operand.vmem [shape: f32[8,1], index: 1, kind: input, shape index: {}]   ;;  %s1965_s2 = inlined_call_operand.vmem [shape: f32[8,1], index: 2, kind: input, shape index: {}]   ;;  %s1966_s3 = inlined_call_operand.vmem [shape: f32[32,8], index: 3, kind: input, shape index: {}]   ;;  %s1967_s4 = inlined_call_operand.vmem [shape: f32[32,1], index: 4, kind: input, shape index: {}]   ;;  %s1968_s5 = inlined_call_operand.vmem [shape: f32[4,32,32], index: 5, kind: input, shape index: {}]   ;;  %s1969_s6 = inlined_call_operand.vmem [shape: f32[4,32,1], index: 6, kind: input, shape index: {}]   ;;  %s1970_s7 = inlined_call_operand.vmem [shape: f32[1,32], index: 7, kind: input, shape index: {}]   ;;  %s1971_s8 = inlined_call_operand.<no memory space> [shape: f32[1,1], index: 8, kind: input, shape index: {}]   ;;  %s1972_s9 = inlined_call_operand.hbm [shape: f32[1,384], index: 9, kind: output, shape index: {}]  }
   0x1   :  { %v14_v0 = vstv %s1971_s8 }
   0x2   :  { %15 = vst [vmem:[#allocation2] sm:$0x1] %v14_v0 }
   0x3   :  { %16 = vsyncpa [#allocation4], 0 }
   0x4   :  { %18 = vsyncpa [#allocation4 + $0x1], 0  ;;  %s1692_s11 = smov 0   ;;  %s1694_s12 = smov 0  }
   0x5   :  { %s1696_s13 = smov 0   ;;  %s1698_s14 = smov 0  }
   0x6 LB: > { %s1713_s8 = sadd.s32 4294967295, %s1626_s14   ;;  %s1253_s15 = sadd.s32 4294967294, %s1626_s14   ;;  %s1626_s14 = sphi %s1698_s14, %s1978_s14   ;;  %s1622_s13 = sphi %s1696_s13, %s1977_s13   ;;  %s1618_s12 = sphi %s1694_s12, %s1976_s12   ;;  %s1614_s11 = sphi %s1692_s11, %s1975_s11  }
   0x7   : > { %s1717_s16 = sadd.s32 1, %s1626_s14   ;;  %s225_s17 = sadd.s32 1, %s1622_s13 }
   0x8   : > { %s222_s18 = ssub.s32 %s1626_s14, %s1717_s16  ;;  %p235_p0 = scmp.ne.s32.totalorder %s1622_s13, %s1618_s12 }
   0x9   : > { %p223_p1 = scmp.eq.s32.totalorder %s222_s18, 0  ;;  %p236_p2 = scmp.eq.s32.totalorder %s1713_s8, 2 }
   0xa   : > { %p241_p3 = scmp.ne.s32.totalorder %s1618_s12, %s1614_s11  ;;  %p242_p4 = scmp.eq.s32.totalorder %s1253_s15, 2 }
   0xb   : > { %s1728_s19 = scalar_select %p223_p1, %s1622_s13, %s225_s17  }
   0xc   : > { %p1730_p5 = por %p236_p2, %p235_p0  ;;  %p1734_p6 = por %p242_p4, %p241_p3 }
   0xd   : > { %p1256_p7 = scmp.ge.s32.totalorder %s1626_s14, 1  ;;  %p290_p8 = scmp.lt.s32.totalorder %s1626_s14, 4 }
   0xf   : > { %p291_p9 = pnand %p1256_p7, %p290_p8 }
  0x10   : > { %v327_v1 = vld [vmem:[%s1964_s1] sm:$0xff] (!%p291_p9)  ;;  %v1628_v2 = vmov (!%p291_p9), 0   ;;  %v456_v4 = vld [vmem:[%s1967_s4 + $0x10] sm:$0xff] (!%p291_p9)  ;;  %vm478_vm0 = vcmask (!%p291_p9), 64512   ;;  %v455_v16 = vld [vmem:[%s1967_s4 + $0x8] sm:$0xff] (!%p291_p9)  ;;  %p323_p10 = scmp.lt.s32.totalorder (!%p291_p9), %s1713_s8, 2 }
  0x11   : > { %294 = sbr.rel (%p291_p9) target bundleno = 1640 (0x668), region = 56  ;;  %1518 = vset.pattern.permute.xlu0 (!%p291_p9), %v1628_v2  ;;  %1519 = vset.pattern.permute.xlu1 (!%p291_p9), %v1628_v2  ;;  %v340_v3 = vld [vmem:[%s1965_s2] sm:$0xff] (!%p291_p9)  ;;  %v586_v6 = vld [vmem:[%s1969_s6 + $0x10] sm:$0xff] (!%p291_p9)  ;;  %v457_v17 = vld [vmem:[%s1967_s4 + $0x18] sm:$0xff] (!%p291_p9)  ;;  %v1629_v42 = vmov (!%p291_p9), 2102212464  }
  0x12   : > { %336 = vperm.xlu0 (!%p291_p9), %1518, %v327_v1   ;;  %v584_v5 = vld [vmem:[%s1969_s6] sm:$0xff] (!%p291_p9)  ;;  %v1276_v8 = vld [vmem:[%s1969_s6 + $0x30] sm:$0xff] (!%p291_p9)  ;;  %v585_v18 = vld [vmem:[%s1969_s6 + $0x8] sm:$0xff] (!%p291_p9)  ;;  %v1630_v44 = vmov (!%p291_p9), 920167782   ;;  %vm608_vm14 = vcmask (!%p291_p9), 261120  }
  0x13   : > { %v1274_v7 = vld [vmem:[%s1969_s6 + $0x20] sm:$0xff] (!%p291_p9)  ;;  %v1288_v10 = vld [vmem:[%s1969_s6 + $0x50] sm:$0xff] (!%p291_p9)  ;;  %v587_v19 = vld [vmem:[%s1969_s6 + $0x18] sm:$0xff] (!%p291_p9)  ;;  %v1631_v48 = vmov (!%p291_p9), 1326507024   ;;  %vm1636_vm15 = vmmov (!%p291_p9), 0  }
  0x14   : > { %v1286_v9 = vld [vmem:[%s1969_s6 + $0x40] sm:$0xff] (!%p291_p9)  ;;  %v1300_v12 = vld [vmem:[%s1969_s6 + $0x70] sm:$0xff] (!%p291_p9)  ;;  %v1275_v20 = vld [vmem:[%s1969_s6 + $0x28] sm:$0xff] (!%p291_p9)  ;;  %v1632_v50 = vmov (!%p291_p9), 683565275   ;;  %s321_s18 = sand.u32 (!%p291_p9), 1, %s1618_s12  }
  0x15   : > { %v1298_v11 = vld [vmem:[%s1969_s6 + $0x60] sm:$0xff] (!%p291_p9)  ;;  %v1277_v21 = vld [vmem:[%s1969_s6 + $0x38] sm:$0xff] (!%p291_p9)  ;;  %v1287_v22 = vld [vmem:[%s1969_s6 + $0x48] sm:$0xff] (!%p291_p9)  ;;  %v1633_v52 = vmov (!%p291_p9), 2475754826   ;;  %s1307_s22 = sshll.u32 (!%p291_p9), %s1713_s8, 4 }
  0x16   : > { %343 = vperm.xlu0 (!%p291_p9), %1518, %v340_v3   ;;  %v1104_v13 = vld [vmem:[#allocation2] sm:$0x1] (!%p291_p9)  ;;  %v1289_v23 = vld [vmem:[%s1969_s6 + $0x58] sm:$0xff] (!%p291_p9)  ;;  %v1299_v26 = vld [vmem:[%s1969_s6 + $0x68] sm:$0xff] (!%p291_p9)  ;;  %v1634_v55 = vmov (!%p291_p9), 2131351028   ;;  %s1921_s27 = scalar_lea.hbm (!%p291_p9), %s1972_s9, %s1307_s22 }
  0x17   : > { %v450_v14 = vld [vmem:[%s1966_s3] sm:$0xff] (!%p291_p9)  ;;  %v1301_v29 = vld [vmem:[%s1969_s6 + $0x78] sm:$0xff] (!%p291_p9) }
  0x18   : > { %1354 = vmatprep.mubr.msk.f32.mxu0 %vm478_vm0, %v450_v14  ;;  %v454_v15 = vld [vmem:[%s1967_s4] sm:$0xff]  ;;  %s324_s23 = scalar_select %p323_p10, %s1713_s8, 2 }
  0x19   : > { %460 = vperm.xlu1 %1519, %v454_v15   ;;  %s1638_s8 = smov [#allocation3]  }
  0x1a   : > { %470 = vperm.xlu0 %1518, %v456_v4   ;;  %s325_s28 = scalar_lea.vmem %s1963_s0, %s324_s23  ;;  %s322_s23 = scalar_lea.vmem [#allocation3], %s321_s18 }
  0x1b   : > { %v1257_v25 = vld [vmem:[%s325_s28] ss:$0 sm:$0xff]  ;;  %s1201_s24 = sshll.u32 %s322_s23, 4  ;;  %s1189_s28 = scalar_lea.sflag [#allocation4], %s321_s18  ;;  %s1923_s24 = int_to_ptr.vmem [resolvable:$true] %s1201_s24 }
  0x1c   : > { %s1564_s29 = scalar_lea.vmem %s1923_s24, 16  ;;  %s1568_s30 = sshll.u32 %s1638_s8, 4  ;;  %s1569_s30 = int_to_ptr.vmem [resolvable:$false] %s1568_s30 }
  0x1d   : > { %465 = vperm.xlu1 %1519, %v455_v16   ;;  %p1565_p11 = scmp.ne.s32.totalorder %s1923_s24, %s1564_s29  ;;  %s1570_s10 = scalar_lea.vmem %s1569_s30, 32 }
  0x1e   : > { %590 = vperm.xlu0 %1518, %v584_v5   ;;  %p1571_p0 = scmp.lt.s32.totalorder %s1923_s24, %s1569_s30  ;;  %p1572_p1 = scmp.lt.s32.totalorder %s1570_s10, %s1564_s29 }
  0x1f   : > { %p1566_p12 = pnand %p1565_p11, %p1730_p5 }
  0x20   : > { %p1573_p2 = por %p1572_p1, %p1571_p0 }
  0x21   : > { %475 = vperm.xlu1 %1519, %v457_v17   ;;  %p1567_p13 = pneg %p1566_p12 }
  0x22   : > { %600 = vperm.xlu0 %1518, %v586_v6  }
  0x23   : > { %p1574_p3 = pnand %p1573_p2, %p1567_p13 }
  0x25   : > { %595 = vperm.xlu1 %1519, %v585_v18  }
  0x26   : > { %722 = vperm.xlu0 %1518, %v1274_v7  }
  0x29   : > { %605 = vperm.xlu1 %1519, %v587_v19  }
  0x2a   : > { %732 = vperm.xlu0 %1518, %v1276_v8  }
  0x2d   : > { %727 = vperm.xlu1 %1519, %v1275_v20  }
  0x2e   : > { %853 = vperm.xlu0 %1518, %v1286_v9  }
  0x31   : > { %737 = vperm.xlu1 %1519, %v1277_v21  }
  0x32   : > { %863 = vperm.xlu0 %1518, %v1288_v10  }
  0x35   : > { %858 = vperm.xlu1 %1519, %v1287_v22  }
  0x36   : > { %984 = vperm.xlu0 %1518, %v1298_v11  }
  0x39   : > { %868 = vperm.xlu1 %1519, %v1289_v23  }
  0x3a   : > { %994 = vperm.xlu0 %1518, %v1300_v12  }
  0x3d   : > { %989 = vperm.xlu1 %1519, %v1299_v26  }
  0x3e   : > { %1107 = vperm.xlu0 %1518, %v1104_v13  }
  0x41   : > { %999 = vperm.xlu1 %1519, %v1301_v29  }
  0x91   : > { %v337_v24 = vpop.permute.xlu0 %336 }
  0x92   : > { %v339_v27 = vmul.f32 %v1257_v25, %v337_v24 }
  0x95   : > { %v344_v28 = vpop.permute.xlu0 %343 }
  0x96   : > { %v1815_v30 = vadd.f32 %v344_v28, %v339_v27 }
  0x98   : > { %v350_v31 = vand.u32 2139095040, %v1815_v30  ;;  %v347_v32 = vand.u32 2147483647, %v1815_v30  ;;  %vm349_vm8 = vcmp.lt.s32.totalorder %v1815_v30, 0  ;;  %vm439_vm13 = vweird.f32 %v1815_v30 }
  0x9a   : > { %v351_v33 = vshrl.u32 %v350_v31, 23  ;;  %v354_v35 = vand.u32 8388607, %v347_v32  ;;  %vm348_vm9 = vcmp.le.f32.partialorder %v347_v32, 0.7853982 }
  0x9c   : > { %v1258_v34 = vadd.s32 4294967169, %v351_v33  ;;  %v355_v38 = vor.u32 8388608, %v354_v35 }
  0x9e   : > { %v357_v36 = vadd.s32 1, %v1258_v34  ;;  %v395_v46 = vshll.u32 %v355_v38, 8 }
  0xa0   : > { %vm358_vm1 = vcmp.gt.s32.totalorder %v357_v36, 0 }
  0xa1   : > { %v359_v37 = vsel %vm358_vm1, %v357_v36, 0 }
  0xa2   : > { %v361_v39 = vand.u32 31, %v359_v37  ;;  %v360_v40 = vshrl.u32 %v359_v37, 5 }
  0xa4   : > { %v362_v41 = vsub.s32 32, %v361_v39  ;;  %v373_v43 = vshll.u32 %v1629_v42, %v361_v39  ;;  %v376_v45 = vshll.u32 %v1630_v44, %v361_v39  ;;  %v364_v51 = vshll.u32 %v1632_v50, %v361_v39 }
  0xa5   : > { %v367_v54 = vshll.u32 %v1633_v52, %v361_v39  ;;  %v370_v57 = vshll.u32 %v1634_v55, %v361_v39  ;;  %vm382_vm2 = vcmp.lt.s32.totalorder %v360_v40, 4  ;;  %vm379_vm3 = vcmp.lt.s32.totalorder %v360_v40, 1 }
  0xa6   : > { %v374_v47 = vshrl.u32 %v1630_v44, %v362_v41  ;;  %v377_v49 = vshrl.u32 %v1631_v48, %v362_v41  ;;  %v365_v53 = vshrl.u32 %v1633_v52, %v362_v41  ;;  %v368_v56 = vshrl.u32 %v1634_v55, %v362_v41 }
  0xa7   : > { %v371_v58 = vshrl.u32 %v1629_v42, %v362_v41  ;;  %v363_v62 = vshrl.u32 %v1632_v50, %v362_v41  ;;  %vm380_vm4 = vcmp.lt.s32.totalorder %v360_v40, 2  ;;  %vm381_vm5 = vcmp.lt.s32.totalorder %v360_v40, 3 }
  0xa8   : > { %v375_v59 = vor.u32 %v374_v47, %v373_v43  ;;  %v378_v60 = vor.u32 %v377_v49, %v376_v45  ;;  %v366_v61 = vor.u32 %v365_v53, %v364_v51  ;;  %v369_v63 = vor.u32 %v368_v56, %v367_v54 }
  0xa9   : > { %v372_v0 = vor.u32 %v371_v58, %v370_v57  ;;  %v451_v58 = vld [vmem:[%s1966_s3 + $0x8] sm:$0xff] }
  0xaa   : > { %v388_v1 = vsel %vm382_vm2, %v375_v59, 920167782  ;;  %v392_v2 = vsel %vm382_vm2, %v378_v60, 1326507024  ;;  %v387_v4 = vsel %vm379_vm3, %v366_v61, %v369_v63  ;;  %v383_v7 = vsel %vm379_vm3, %v363_v62, %v366_v61  ;;  %v580_v60 = vld [vmem:[%s1968_s5] sm:$0xff]  ;;  %v461_v61 = vpop.permute.xlu1 %460 }
  0xab   : > { %v384_v3 = vsel %vm382_vm2, %v372_v0, 2102212464  ;;  %v389_v5 = vsel %vm381_vm5, %v372_v0, %v388_v1  ;;  %v391_v6 = vsel %vm379_vm3, %v369_v63, %v372_v0  ;;  %v393_v10 = vsel %vm381_vm5, %v375_v59, %v392_v2  ;;  %v452_v59 = vld [vmem:[%s1966_s3 + $0x10] sm:$0xff]  ;;  %1368 = vmatprep.mubr.msk.f32.mxu1 %vm608_vm14, %v580_v60 }
  0xac   : > { %v385_v8 = vsel %vm381_vm5, %v369_v63, %v384_v3  ;;  %v390_v9 = vsel %vm380_vm4, %v387_v4, %v389_v5  ;;  %v394_v11 = vsel %vm380_vm4, %v391_v6, %v393_v10  ;;  %v471_v5 = vpop.permute.xlu0 %470  ;;  %v1284_v60 = vld [vmem:[%s1968_s5 + $0x50] sm:$0xff] }
  0xad   : > { %v1821_v12 = vmul.u32.u64.low %v395_v46, %v390_v9  ;;  %v1822_v13 = vmul.u32.u64.high %v395_v46, %v390_v9, %v1821_v12  ;;  %v1824_v14 = vmul.u32.u64.low %v395_v46, %v394_v11  ;;  %v1825_v15 = vmul.u32.u64.high %v395_v46, %v394_v11, %v1824_v14 }
  0xae   : > { %v386_v16 = vsel %vm380_vm4, %v383_v7, %v385_v8  ;;  %v466_v62 = vpop.permute.xlu1 %465 }
  0xaf   : > { %v405_v17 = vadd.s32 1, %v1822_v13  ;;  %v402_v18 = vmul.u32 %v395_v46, %v386_v16  ;;  %vm404_vm6 = vc.u32 %v1825_v15, %v1821_v12  ;;  %v403_v31 = vadd.s32 %v1821_v12, %v1825_v15  ;;  %v581_v15 = vld [vmem:[%s1968_s5 + $0x8] sm:$0xff]  ;;  %v582_v16 = vld [vmem:[%s1968_s5 + $0x10] sm:$0xff] }
  0xb1   : > { %v406_v19 = vsel %vm404_vm6, %v405_v17, %v1822_v13  ;;  %v583_v17 = vld [vmem:[%s1968_s5 + $0x18] sm:$0xff] }
  0xb2   : > { %v407_v20 = vadd.s32 %v406_v19, %v402_v18  ;;  %v476_v3 = vpop.permute.xlu1 %475  ;;  %v1270_v18 = vld [vmem:[%s1968_s5 + $0x20] sm:$0xff] }
  0xb4   : > { %v408_v21 = vadd.s32 536870912, %v407_v20 }
  0xb6   : > { %v409_v22 = vshrl.u32 %v408_v21, 30  ;;  %v596_v19 = vpop.permute.xlu1 %595 }
  0xb8   : > { %v410_v23 = vshll.u32 %v409_v22, 30  ;;  %v433_v46 = vsub.s32 4, %v409_v22 }
  0xba   : > { %v411_v24 = vsub.s32 %v407_v20, %v410_v23  ;;  %v434_v48 = vsel %vm349_vm8, %v433_v46, %v409_v22  ;;  %v591_v20 = vpop.permute.xlu0 %590 }
  0xbb   : > { %v436_v49 = vsel %vm348_vm9, 0, %v434_v48 }
  0xbc   : > { %v413_v25 = vsub.s32 0, %v411_v24  ;;  %v440_v50 = vand.u32 3, %v436_v49 }
  0xbe   : > { %v1259_v26 = vmin.u32 %v413_v25, %v411_v24  ;;  %vm445_vm10 = vcmp.eq.s32.totalorder %v440_v50, 2  ;;  %vm442_vm11 = vcmp.eq.s32.totalorder %v440_v50, 0  ;;  %vm441_vm12 = vcmp.lt.s32.totalorder %v440_v50, 2  ;;  %v606_v25 = vpop.permute.xlu1 %605 }
  0xc0   : > { %v415_v27 = vclz %v1259_v26 }
  0xc2   : > { %v1260_v28 = vadd.s32 4294967294, %v415_v27  ;;  %v601_v27 = vpop.permute.xlu0 %600 }
  0xc4   : > { %vm1261_vm7 = vcmp.lt.s32.totalorder %v1260_v28, 0 }
  0xc5   : > { %v418_v29 = vsel %vm1261_vm7, 0, %v1260_v28 }
  0xc6   : > { %v419_v33 = vsub.s32 32, %v418_v29  ;;  %v423_v34 = vsub.s32 4294967266, %v418_v29  ;;  %v420_v35 = vshll.u32 %v411_v24, %v418_v29 }
  0xc8   : > { %v421_v36 = vshrl.u32 %v403_v31, %v419_v33  ;;  %v424_v37 = vadd.s32 127, %v423_v34 }
  0xca   : > { %v422_v38 = vor.u32 %v421_v36, %v420_v35  ;;  %v425_v39 = vshll.u32 %v424_v37, 23 }
  0xcc   : > { %v426_v40 = vor.u32 4788187, %v425_v39  ;;  %v429_v42 = vcvt.s32.f32 %v422_v38  ;;  %v1271_v39 = vld [vmem:[%s1968_s5 + $0x28] sm:$0xff] }
  0xce   : > { %v427_v41 = vand.u32 2147483647, %v426_v40  ;;  %v1272_v40 = vld [vmem:[%s1968_s5 + $0x30] sm:$0xff] }
  0xd0   : > { %v430_v43 = vmul.f32 %v429_v42, %v427_v41  ;;  %v1273_v41 = vld [vmem:[%s1968_s5 + $0x38] sm:$0xff]  ;;  %v1282_v42 = vld [vmem:[%s1968_s5 + $0x40] sm:$0xff] }
  0xd2   : > { %v431_v44 = vxor.u32 2147483648, %v430_v43 }
  0xd4   : > { %v432_v45 = vsel %vm349_vm8, %v431_v44, %v430_v43  ;;  %v728_v43 = vpop.permute.xlu1 %727  ;;  %v723_v44 = vpop.permute.xlu0 %722 }
  0xd5   : > { %v435_v47 = vsel %vm348_vm9, %v1815_v30, %v432_v45  ;;  %v453_v30 = vld [vmem:[%s1966_s3 + $0x18] sm:$0xff] }
  0xd6   : > { %1520 = vcosq.f32 %v435_v47 }
  0xd7   : > { %1522 = vsinq.f32 %v435_v47 }
  0xd8   : > { %v738_v49 = vpop.permute.xlu1 %737 }
  0xe0   : > { %v1521_v51 = vpop.eup %1520 }
  0xe1   : > { %v1523_v52 = vpop.eup %1522  ;;  %v446_v53 = vxor.u32 2147483648, %v1521_v51 }
  0xe2   : > { %v443_v54 = vxor.u32 2147483648, %v1523_v52 }
  0xe3   : > { %v447_v55 = vsel %vm445_vm10, %v446_v53, %v1523_v52 }
  0xe4   : > { %v444_v56 = vsel %vm442_vm11, %v1521_v51, %v443_v54  ;;  %v733_v51 = vpop.permute.xlu0 %732 }
  0xe5   : > { %v448_v32 = vsel %vm441_vm12, %v444_v56, %v447_v55 }
  0xe6   : > { %v449_v57 = vsel %vm439_vm13, nan, %v448_v32 }
  0xe7   : > { %1352 = vmatprep.subr.mxu0 %v449_v57 }
  0xe8   : > { %1353 = vmatpush3.msra.mxu0 %v449_v57 }
  0xe9   : > { %1355 = vmatmul.mubr.msk.f32.vlgmr.msra.gmra.mrb[0].mxu0 %vm478_vm0, %v451_v58 }
  0xea   : > { %1357 = vmatprep.mubr.msk.f32.mxu0 %vm478_vm0, %v452_v59 }
  0xed   : > { %1358 = vmatmul.mubr.msk.f32.gmra.mrb[2].mxu0 %vm478_vm0, %v453_v30  ;;  %v1283_v30 = vld [vmem:[%s1968_s5 + $0x48] sm:$0xff] }
  0xee   : > { %1382 = vmatprep.mubr.msk.f32.mxu0 %vm608_vm14, %v1270_v18  ;;  %v1296_v18 = vld [vmem:[%s1968_s5 + $0x70] sm:$0xff] }
 0x1bc   : > { %v1356_v63 = vpop.f32.mrb[0].mxu0 }
 0x1bd   : > { %v563_v0 = vadd.f32 %v1356_v63, %v466_v62  ;;  %v557_v1 = vpop.f32.mrb[1].mxu0  ;;  %v1294_v62 = vld [vmem:[%s1968_s5 + $0x60] sm:$0xff]  ;;  %v859_v63 = vpop.permute.xlu1 %858 }
 0x1be   : > { %v558_v2 = vadd.f32 %v557_v1, %v461_v61  ;;  %v1285_v61 = vld [vmem:[%s1968_s5 + $0x58] sm:$0xff] }
 0x1bf   : > { %1524 = vtanh.f32 %v563_v0  ;;  %v854_v0 = vpop.permute.xlu0 %853 }
 0x1c0   : > { %1526 = vtanh.f32 %v558_v2  ;;  %v1359_v4 = vpop.f32.mrb[2].mxu0 }
 0x1c1   : > { %v573_v6 = vadd.f32 %v1359_v4, %v476_v3  ;;  %v567_v7 = vpop.f32.mrb[3].mxu0 }
 0x1c2   : > { %v568_v8 = vadd.f32 %v567_v7, %v471_v5  ;;  %v869_v5 = vpop.permute.xlu1 %868 }
 0x1c3   : > { %1528 = vtanh.f32 %v573_v6  ;;  %v864_v7 = vpop.permute.xlu0 %863 }
 0x1c4   : > { %1530 = vtanh.f32 %v568_v8 }
 0x1c9   : > { %v1525_v9 = vpop.eup %1524 }
 0x1ca   : > { %v1527_v10 = vpop.eup %1526 }
 0x1cb   : > { %v1427_v11 = vpack.c.bf16 %v1525_v9, %v1527_v10 }
 0x1cd   : > { %v1529_v12 = vpop.eup %1528  ;;  %1428 = vmatprep.subr.bf16.mxu1 %v1427_v11 }
 0x1ce   : > { %v1531_v13 = vpop.eup %1530  ;;  %1430 = vmatpush3.bf16.msra.mxu1 %v1427_v11 }
 0x1cf   : > { %v1431_v14 = vpack.c.bf16 %v1529_v12, %v1531_v13 }
 0x1d1   : > { %1432 = vmatprep.subr.bf16.mxu1 %v1431_v14 }
 0x1d2   : > { %1434 = vmatpush3.bf16.msra.mxu1 %v1431_v14 }
 0x1d5   : > { %1369 = vmatmul.mubr.msk.f32.vlgmr.msra.gmra.mrb[0].mxu1 %vm608_vm14, %v581_v15 }
 0x1d6   : > { %1371 = vmatprep.mubr.msk.f32.mxu1 %vm608_vm14, %v582_v16 }
 0x1d9   : > { %1372 = vmatmul.mubr.msk.f32.gmra.mrb[2].mxu1 %vm608_vm14, %v583_v17  ;;  %v1295_v17 = vld [vmem:[%s1968_s5 + $0x68] sm:$0xff] }
 0x1da   : > { %1396 = vmatprep.mubr.msk.f32.mxu1 %vm608_vm14, %v1282_v42  ;;  %v1103_v42 = vld [vmem:[%s1970_s7] sm:$0x1] }
 0x2a8   : > { %v1370_v21 = vpop.f32.mrb[0].mxu1 }
 0x2a9   : > { %v693_v22 = vadd.f32 %v1370_v21, %v596_v19  ;;  %v687_v23 = vpop.f32.mrb[1].mxu1  ;;  %v1297_v19 = vld [vmem:[%s1968_s5 + $0x78] sm:$0xff]  ;;  %v1637_v21 = vmov 0.0  }
 0x2aa   : > { %v688_v24 = vadd.f32 %v687_v23, %v591_v20  ;;  %v1635_v20 = vmov 0.0|0.0   ;;  %v985_v23 = vpop.permute.xlu0 %984 }
 0x2ab   : > { %1532 = vtanh.f32 %v693_v22  ;;  %v990_v22 = vpop.permute.xlu1 %989 }
 0x2ac   : > { %1534 = vtanh.f32 %v688_v24  ;;  %v1373_v26 = vpop.f32.mrb[2].mxu1 }
 0x2ad   : > { %v703_v28 = vadd.f32 %v1373_v26, %v606_v25  ;;  %v697_v29 = vpop.f32.mrb[3].mxu1 }
 0x2ae   : > { %v698_v31 = vadd.f32 %v697_v29, %v601_v27 }
 0x2af   : > { %1536 = vtanh.f32 %v703_v28  ;;  %v1000_v28 = vpop.permute.xlu1 %999 }
 0x2b0   : > { %1538 = vtanh.f32 %v698_v31  ;;  %v995_v31 = vpop.permute.xlu0 %994 }
 0x2b5   : > { %v1533_v33 = vpop.eup %1532 }
 0x2b6   : > { %v1535_v34 = vpop.eup %1534 }
 0x2b7   : > { %v1435_v35 = vpack.c.bf16 %v1533_v33, %v1535_v34 }
 0x2b9   : > { %v1537_v36 = vpop.eup %1536  ;;  %1436 = vmatprep.subr.bf16.mxu0 %v1435_v35 }
 0x2ba   : > { %v1539_v37 = vpop.eup %1538  ;;  %1438 = vmatpush3.bf16.msra.mxu0 %v1435_v35 }
 0x2bb   : > { %v1439_v38 = vpack.c.bf16 %v1537_v36, %v1539_v37 }
 0x2bd   : > { %1440 = vmatprep.subr.bf16.mxu0 %v1439_v38 }
 0x2be   : > { %1442 = vmatpush3.bf16.msra.mxu0 %v1439_v38 }
 0x2c1   : > { %1383 = vmatmul.mubr.msk.f32.vlgmr.msra.gmra.mrb[4].mxu0 %vm608_vm14, %v1271_v39 }
 0x2c2   : > { %1385 = vmatprep.mubr.msk.f32.mxu0 %vm608_vm14, %v1272_v40 }
 0x2c5   : > { %1386 = vmatmul.mubr.msk.f32.gmra.mrb[6].mxu0 %vm608_vm14, %v1273_v41 }
 0x2c6   : > { %1410 = vmatprep.mubr.msk.f32.mxu0 %vm608_vm14, %v1294_v62 }
 0x394   : > { %v1384_v45 = vpop.f32.mrb[4].mxu0 }
 0x395   : > { %v824_v46 = vadd.f32 %v1384_v45, %v728_v43  ;;  %v818_v47 = vpop.f32.mrb[5].mxu0  ;;  %v1110_v43 = vlaneseq }
 0x396   : > { %v819_v48 = vadd.f32 %v818_v47, %v723_v44 }
 0x397   : > { %1540 = vtanh.f32 %v824_v46  ;;  %v1111_v44 = vshrl.u32 %v1110_v43, 7  ;;  %v1108_v46 = vpop.permute.xlu0 %1107 }
 0x398   : > { %1542 = vtanh.f32 %v819_v48  ;;  %v1387_v50 = vpop.f32.mrb[6].mxu0 }
 0x399   : > { %v834_v52 = vadd.f32 %v1387_v50, %v738_v49  ;;  %v828_v53 = vpop.f32.mrb[7].mxu0  ;;  %v1112_v45 = vsub.s32 0, %v1111_v44 }
 0x39a   : > { %v829_v54 = vadd.f32 %v828_v53, %v733_v51 }
 0x39b   : > { %1544 = vtanh.f32 %v834_v52  ;;  %v1113_v47 = vrot.slane %v1108_v46, %v1112_v45 }
 0x39c   : > { %1546 = vtanh.f32 %v829_v54 }
 0x3a1   : > { %v1541_v55 = vpop.eup %1540 }
 0x3a2   : > { %v1543_v56 = vpop.eup %1542 }
 0x3a3   : > { %v1443_v32 = vpack.c.bf16 %v1541_v55, %v1543_v56 }
 0x3a5   : > { %v1545_v57 = vpop.eup %1544  ;;  %1444 = vmatprep.subr.bf16.mxu1 %v1443_v32 }
 0x3a6   : > { %v1547_v58 = vpop.eup %1546  ;;  %1446 = vmatpush3.bf16.msra.mxu1 %v1443_v32 }
 0x3a7   : > { %v1447_v59 = vpack.c.bf16 %v1545_v57, %v1547_v58 }
 0x3a9   : > { %1448 = vmatprep.subr.bf16.mxu1 %v1447_v59 }
 0x3aa   : > { %1450 = vmatpush3.bf16.msra.mxu1 %v1447_v59 }
 0x3ab   : > { %1459 = vmatprep.subr.bf16.mxu1 %v1635_v20 }
 0x3ad   : > { %1397 = vmatmul.mubr.msk.f32.vlgmr.msra.gmra.mrb[4].mxu1 %vm608_vm14, %v1283_v30 }
 0x3ae   : > { %1399 = vmatprep.mubr.msk.f32.mxu1 %vm608_vm14, %v1284_v60 }
 0x3b1   : > { %1400 = vmatmul.mubr.msk.f32.gmra.mrb[6].mxu1 %vm608_vm14, %v1285_v61 }
 0x3b2   : > { %1424 = vmatprep.mubr.msk.f32.mxu1 %vm1636_vm15, %v1637_v21 }
 0x480   : > { %v1398_v1 = vpop.f32.mrb[4].mxu1 }
 0x481   : > { %v955_v2 = vadd.f32 %v1398_v1, %v859_v63  ;;  %v949_v3 = vpop.f32.mrb[5].mxu1 }
 0x482   : > { %v950_v4 = vadd.f32 %v949_v3, %v854_v0 }
 0x483   : > { %1548 = vtanh.f32 %v955_v2 }
 0x484   : > { %1550 = vtanh.f32 %v950_v4  ;;  %v1401_v6 = vpop.f32.mrb[6].mxu1 }
 0x485   : > { %v965_v8 = vadd.f32 %v1401_v6, %v869_v5  ;;  %v959_v9 = vpop.f32.mrb[7].mxu1 }
 0x486   : > { %v960_v10 = vadd.f32 %v959_v9, %v864_v7 }
 0x487   : > { %1552 = vtanh.f32 %v965_v8 }
 0x488   : > { %1554 = vtanh.f32 %v960_v10 }
 0x48d   : > { %v1549_v11 = vpop.eup %1548 }
 0x48e   : > { %v1551_v12 = vpop.eup %1550 }
 0x48f   : > { %v1451_v13 = vpack.c.bf16 %v1549_v11, %v1551_v12 }
 0x491   : > { %v1553_v14 = vpop.eup %1552  ;;  %1452 = vmatprep.subr.bf16.mxu0 %v1451_v13 }
 0x492   : > { %v1555_v15 = vpop.eup %1554  ;;  %1454 = vmatpush3.bf16.msra.mxu0 %v1451_v13 }
 0x493   : > { %v1455_v16 = vpack.c.bf16 %v1553_v14, %v1555_v15 }
 0x495   : > { %1456 = vmatprep.subr.bf16.mxu0 %v1455_v16 }
 0x496   : > { %1458 = vmatpush3.bf16.msra.mxu0 %v1455_v16 }
 0x499   : > { %1411 = vmatmul.mubr.msk.f32.vlgmr.msra.gmra.mrb[8].mxu0 %vm608_vm14, %v1295_v17 }
 0x49a   : > { %1413 = vmatprep.mubr.msk.f32.mxu0 %vm608_vm14, %v1296_v18 }
 0x49d   : > { %1414 = vmatmul.mubr.msk.f32.gmra.mrb[10].mxu0 %vm608_vm14, %v1297_v19 }
 0x56c   : > { %v1412_v24 = vpop.f32.mrb[8].mxu0 }
 0x56d   : > { %v1086_v25 = vadd.f32 %v1412_v24, %v990_v22  ;;  %v1080_v26 = vpop.f32.mrb[9].mxu0 }
 0x56e   : > { %v1081_v27 = vadd.f32 %v1080_v26, %v985_v23 }
 0x56f   : > { %1556 = vtanh.f32 %v1086_v25 }
 0x570   : > { %1558 = vtanh.f32 %v1081_v27  ;;  %v1415_v29 = vpop.f32.mrb[10].mxu0 }
 0x571   : > { %v1096_v33 = vadd.f32 %v1415_v29, %v1000_v28  ;;  %v1090_v34 = vpop.f32.mrb[11].mxu0 }
 0x572   : > { %v1091_v35 = vadd.f32 %v1090_v34, %v995_v31 }
 0x573   : > { %1560 = vtanh.f32 %v1096_v33 }
 0x574   : > { %1562 = vtanh.f32 %v1091_v35 }
 0x579   : > { %v1557_v36 = vpop.eup %1556 }
 0x57a   : > { %v1559_v37 = vpop.eup %1558 }
 0x57b   : > { %v1460_v38 = vpack.c.bf16 %v1557_v36, %v1559_v37 }
 0x57d   : > { %v1561_v39 = vpop.eup %1560  ;;  %1461 = vmatpush3.bf16.msra.mxu1 %v1460_v38 }
 0x57e   : > { %v1563_v40 = vpop.eup %1562  ;;  %1462 = vmatprep.subr.bf16.mxu1 %v1635_v20 }
 0x57f   : > { %v1463_v41 = vpack.c.bf16 %v1561_v39, %v1563_v40 }
 0x581   : > { %1464 = vmatpush3.bf16.msra.mxu1 %v1463_v41 }
 0x584   : > { %1425 = vmatmul.mubr.msk.f32.vlgmr.msra.gmra.mrb[8].mxu1 %vm608_vm14, %v1103_v42 }
 0x657   : > { %v1183_v48 = vpop.f32.mrb[8].mxu1 }
 0x658   : > { %v1184_v49 = vadd.f32 %v1183_v48, %v1113_v47  ;;  %v1426_v50 = vpop.f32.mrb[9].mxu1 }
 0x65a   : > { %1187 = vst [vmem:[%s322_s23] sm:$0x1] %v1184_v49 }
 0x65b   : > { %1577 = shalt.err (!%p1574_p3)
}
 0x65c   : > { %s1578_s15 = scalar_lea.hbm %s1921_s27, 16  ;;  %s1582_s22 = scalar_lea.hbm %s1972_s9, 48 }
 0x65d   : > { %p1579_p4 = scmp.ne.s32.totalorder %s1921_s27, %s1578_s15  ;;  %p1583_p9 = scmp.lt.u32.totalorder %s1921_s27, %s1972_s9 }
 0x65e   : > { %p1584_p10 = scmp.lt.u32.totalorder %s1582_s22, %s1578_s15  ;;  %p1586_p12 = scmp.lt.u32.totalorder %s1578_s15, %s1921_s27 }
 0x65f   : > { %p1580_p7 = pnand %p1579_p4, %p1730_p5 }
 0x660   : > { %p1585_p11 = por %p1584_p10, %p1583_p9 }
 0x661   : > { %p1581_p8 = pneg %p1580_p7 }
 0x662   : > { %p1587_p13 = por %p1586_p12, %p1585_p11 }
 0x664   : > { %p1588_p0 = pnand %p1587_p13, %p1581_p8 }
 0x666   : > { %1591 = shalt.err (!%p1588_p0)
}
 0x667   : > { %1469 = dma.vmem_to_hbm [thread:$0]  (%p1730_p5), %s1923_s24, 16, %s1921_s27, %s1189_s28  }
 0x668 PF: > { %p1475_p1 = scmp.ge.s32.totalorder %s1626_s14, 2  ;;  %s1213_s26 = sand.u32 1, %s1614_s11  }
 0x669   : > { %s1214_s29 = scalar_lea.sflag [#allocation4], %s1213_s26 }
 0x66a   : > { %p1472_p2 = pnand %p1475_p1, %p1734_p6 }
 0x66c   : > { %1609 = dma.done.wait (!%p1472_p2), %s1214_s29, 16  }
 0x66d   : > { %1611 = vsyncadd (!%p1472_p2), %s1214_s29, 4294967280  ;;  %p21_p3 = scmp.ge.s32.totalorder %s1717_s16, 5   ;;  %s1975_s11 = smov %s1618_s12 }
 0x66e   : > { %s1976_s12 = smov %s1622_s13  ;;  %s1977_s13 = smov %s1728_s19 }
 0x66f   : > { %s1978_s14 = smov %s1717_s16  ;;  %23 = sbr.rel (!%p21_p3) target bundleno = 6 (0x6), region = 97 }
 0x676   :  { %1218 = vsyncpa [#allocation4], 1 }
 0x677   :  { %1220 = vsyncpa [#allocation4 + $0x1], 1 }

</bundles_post_ra>
